<compile_context>
chip_gen: v7x
topology: tpu7x:2x2x1
jax: 0.10.0
libtpu: 0.0.40
codegen_flags: <defaults>
</compile_context>

<pallas_src>
import numpy as np
import jax
import jax.numpy as jnp
from jax.experimental import pallas as pl
from jax.experimental.pallas import tpu as pltpu


def _make_kernel(batch: int, groups: int, num_kernels: int, kernel_dim: int):
    B, Gb, K, D = batch, groups, num_kernels, kernel_dim
    KD = K * D

    def kernel(x_ref, w1_ref, b1_ref, w2_ref, b2_ref, wf_ref, w3b_ref, b3_ref,
               out_ref):
        # x_ref block: (1, input_dim, Gb*B)  -- batch on lanes.
        x_t = x_ref[0]                                             # (in, GbB)

        # fc1 + relu:  (h2, in) @ (in, GbB)
        h0 = jnp.dot(w1_ref[...], x_t,
                     preferred_element_type=jnp.float32) + b1_ref[...]
        h0 = jnp.maximum(h0, 0.0)                                  # (h2, GbB)

        # fc2 (single intermediate Linear) + relu
        h1 = jnp.dot(w2_ref[...], h0,
                     preferred_element_type=jnp.float32) + b2_ref[...]
        h1 = jnp.maximum(h1, 0.0)                                  # (h2, GbB)

        # Fused [w3a | T]^T @ h1: one MXU op for both fc3's h1 contribution
        # (row 0) and the minibatch-discrimination projection (rows 1..KD).
        fused = jnp.dot(wf_ref[...], h1,
                        preferred_element_type=jnp.float32)        # (1+KD, GbB)
        h1_logit = fused[0:1, :]                                   # (1, GbB)
        act_t = fused[1:1 + KD, :]                                 # (KD, GbB)

        # MinibatchDiscrimination, per minibatch g (pairwise interactions only
        # within a minibatch).  Gb is a compile-time constant -> unrolled.
        # Self term j == i is included (exp(0)=1), matching the PyTorch module.
        parts = []
        for g in range(Gb):
            a_g = act_t[:, g * B:(g + 1) * B]                      # (KD, B)
            d_g = jnp.abs(a_g[:, :, None] - a_g[:, None, :])       # (KD, B, B)
            # Sum over the kernel_dim axis: D plain vreg adds (no MXU, no mask).
            s_g = jnp.sum(d_g.reshape(K, D, B, B), axis=1)         # (K, B, B)
            # Sum over j: lane reduction.
            parts.append(jnp.sum(jnp.exp(-s_g), axis=-1))          # (K, B)
        mb_t = parts[0] if Gb == 1 else jnp.concatenate(parts, axis=-1)  # (K, GbB)

        # fc3 on concat([h1, mb]) == h1@w3a (row 0 of fused) + mb@w3b + b3.
        mb_logit = jnp.sum(w3b_ref[...] * mb_t, axis=0, keepdims=True)   # (1, GbB)
        logit = h1_logit + mb_logit + b3_ref[0, 0]
        out_ref[0] = jax.nn.sigmoid(logit)                          # (1, GbB)

    return kernel


def make_params(key, input_dim, hidden_dim, num_kernels=5, kernel_dim=3):
    """Deterministic parameter init (shapes as in the PyTorch module)."""
    h2 = hidden_dim * 2
    ks = jax.random.split(key, 8)

    def lin_init(kw, kb, fan_in, fan_out):
        bound = 1.0 / np.sqrt(fan_in)
        w = jax.random.uniform(kw, (fan_in, fan_out), jnp.float32, -bound, bound)
        b = jax.random.uniform(kb, (1, fan_out), jnp.float32, -bound, bound)
        return w, b

    w1, b1 = lin_init(ks[0], ks[1], input_dim, h2)
    w2, b2 = lin_init(ks[2], ks[3], h2, h2)
    T = 0.02 * jax.random.normal(ks[4], (h2, num_kernels * kernel_dim), jnp.float32)
    w3, b3 = lin_init(ks[5], ks[6], h2 + num_kernels, 1)
    w3a, w3b = w3[:h2, :], w3[h2:, :]
    return {
        # Reference-layout params (mirror torch.nn.Linear, pre-transposed to (in,out)).
        "w1": w1, "b1": b1, "w2": w2, "b2": b2,
        "T": T, "w3a": w3a, "w3b": w3b, "b3": b3,
        # Kernel-layout (batch-on-lanes) params, built ONCE here:
        "w1_t": w1.T, "b1_t": b1.T,                              # (h2,in), (h2,1)
        "w2_t": w2.T, "b2_t": b2.T,                              # (h2,h2), (h2,1)
        # Fused [w3a | T] transposed: row 0 = w3a^T (logit), rows 1..KD = T^T.
        "wf_t": jnp.concatenate([w3a, T], axis=1).T,             # (1+K*D, h2)
    }


def discriminator_forward_batched(xs, params, num_kernels=5, kernel_dim=3,
                                  group_size=None):
    """xs: (G, B, input_dim) -- G independent minibatches.

    group_size (Gb) minibatches are packed into each grid step; the grid has
    ceil(G/Gb) steps (pad G with zero minibatches if needed)."""
    G, B, input_dim = xs.shape
    Gb = group_size if group_size is not None else min(G, 8)
    steps = -(-G // Gb)
    G_pad = steps * Gb
    if G_pad != G:
        xs = jnp.concatenate(
            [xs, jnp.zeros((G_pad - G, B, input_dim), xs.dtype)], axis=0)

    GbB = Gb * B
    # Layout plumbing (host side, once per call): put the Gb*B batch axis on
    # lanes so the kernel never needs an in-kernel transpose.
    xs_t = jnp.swapaxes(xs.reshape(steps, GbB, input_dim), 1, 2)  # (steps, in, GbB)

    w1_t, b1_t = params["w1_t"], params["b1_t"]
    w2_t, b2_t = params["w2_t"], params["b2_t"]
    wf_t, w3b, b3 = params["wf_t"], params["w3b"], params["b3"]

    kernel = _make_kernel(B, Gb, num_kernels, kernel_dim)

    def whole(a):  # full-array VMEM block, same block for every grid step
        n = a.ndim
        return pl.BlockSpec(a.shape, lambda g: (0,) * n)

    out = pl.pallas_call(
        kernel,
        out_shape=jax.ShapeDtypeStruct((steps, 1, GbB), jnp.float32),
        grid=(steps,),
        in_specs=[
            pl.BlockSpec((1, input_dim, GbB), lambda g: (g, 0, 0)),   # x slab
            whole(w1_t), whole(b1_t), whole(w2_t), whole(b2_t),
            whole(wf_t), whole(w3b),
            pl.BlockSpec(memory_space=pltpu.MemorySpace.SMEM),        # b3 scalar
        ],
        out_specs=pl.BlockSpec((1, 1, GbB), lambda g: (g, 0, 0)),     # lane-dense
        compiler_params=pltpu.CompilerParams(
            dimension_semantics=("parallel",)),                       # v7x: both TCs
    )(xs_t, w1_t, b1_t, w2_t, b2_t, wf_t, w3b, b3)

    return out.reshape(G_pad, B, 1)[:G]


def discriminator_forward(x, params, num_kernels=5, kernel_dim=3):
    """Single-minibatch forward matching the PyTorch module: x (B, input_dim)."""
    return discriminator_forward_batched(
        x[None], params, num_kernels, kernel_dim, group_size=1)[0]


def discriminator_reference(x, p, num_kernels=5, kernel_dim=3):
    """Pure-JAX reference mirroring the PyTorch forward exactly."""
    h0 = jax.nn.relu(x @ p["w1"] + p["b1"])
    h1 = jax.nn.relu(h0 @ p["w2"] + p["b2"])
    act = (h1 @ p["T"]).reshape(-1, num_kernels, kernel_dim)
    diffs = act[:, :, :, None] - jnp.transpose(act, (1, 2, 0))[None]
    abs_diffs = jnp.sum(jnp.abs(diffs), axis=2)
    mb = jnp.sum(jnp.exp(-abs_diffs), axis=2)
    h2cat = jnp.concatenate([h1, mb], axis=1)
    w3 = jnp.concatenate([p["w3a"], p["w3b"]], axis=0)
    return jax.nn.sigmoid(h2cat @ w3 + p["b3"])


if __name__ == "__main__":
    B, INPUT_DIM, HIDDEN_DIM = 8, 4, 16   # hidden*2 = 32

    key = jax.random.PRNGKey(0)
    k_x, k_p, k_xs = jax.random.split(key, 3)
    x = jax.random.normal(k_x, (B, INPUT_DIM), jnp.float32)
    params = make_params(k_p, INPUT_DIM, HIDDEN_DIM)

    # Single-minibatch path (matches the PyTorch module interface).
    out = jax.block_until_ready(discriminator_forward(x, params))
    ref = jax.block_until_ready(discriminator_reference(x, params))
    assert out.shape == (B, 1)
    assert np.allclose(np.asarray(out), np.asarray(ref), rtol=1e-5, atol=1e-5), \
        "Pallas output mismatch vs reference (single minibatch)"

    # Batched path: G minibatches, Gb=4 per grid step -> 2 grid steps
    # (even step count so v7x can shard across both TensorCores).
    G, Gb = 8, 4
    xs = jax.random.normal(k_xs, (G, B, INPUT_DIM), jnp.float32)
    outs = jax.block_until_ready(
        discriminator_forward_batched(xs, params, group_size=Gb))
    refs = jax.block_until_ready(
        jax.vmap(lambda xb: discriminator_reference(xb, params))(xs))
    assert outs.shape == (G, B, 1)
    assert np.allclose(np.asarray(outs), np.asarray(refs), rtol=1e-5, atol=1e-5), \
        "Pallas output mismatch vs reference (batched grid)"

    print("KERNEL_OK")
</pallas_src>

<mosaic_0001>
module attributes {stable_mosaic.version = 11 : i64} {
  func.func @kernel(%arg0: i32, %arg1: memref<1x4x8xf32, #tpu.memory_space<vmem>>, %arg2: memref<32x4xf32, #tpu.memory_space<vmem>>, %arg3: memref<32x1xf32, #tpu.memory_space<vmem>>, %arg4: memref<32x32xf32, #tpu.memory_space<vmem>>, %arg5: memref<32x1xf32, #tpu.memory_space<vmem>>, %arg6: memref<16x32xf32, #tpu.memory_space<vmem>>, %arg7: memref<5x1xf32, #tpu.memory_space<vmem>>, %arg8: memref<1x1xf32, #tpu.memory_space<smem>>, %arg9: memref<1x1x8xf32, #tpu.memory_space<vmem>>) attributes {dimension_semantics = [#tpu.dimension_semantics<parallel>], iteration_bounds = array<i64: 1>, scalar_prefetch = 0 : i64, scratch_operands = 0 : i64, tpu.core_type = #tpu.core_type<tc>, window_params = [{transform_indices = @transform_0, window_bounds = array<i64: 1, 4, 8>}, {pipeline_mode = #tpu.pipeline_mode<synchronous>, transform_indices = @transform_1, window_bounds = array<i64: 32, 4>}, {pipeline_mode = #tpu.pipeline_mode<synchronous>, transform_indices = @transform_2, window_bounds = array<i64: 32, 1>}, {pipeline_mode = #tpu.pipeline_mode<synchronous>, transform_indices = @transform_3, window_bounds = array<i64: 32, 32>}, {pipeline_mode = #tpu.pipeline_mode<synchronous>, transform_indices = @transform_4, window_bounds = array<i64: 32, 1>}, {pipeline_mode = #tpu.pipeline_mode<synchronous>, transform_indices = @transform_5, window_bounds = array<i64: 16, 32>}, {pipeline_mode = #tpu.pipeline_mode<synchronous>, transform_indices = @transform_6, window_bounds = array<i64: 5, 1>}, {transform_indices = @transform_7, window_bounds = array<i64: 1, 1>}, {transform_indices = @transform_8, window_bounds = array<i64: 1, 1, 8>}]} {
    %c0 = arith.constant 0 : index
    %c0_0 = arith.constant 0 : index
    %c0_1 = arith.constant 0 : index
    %0 = vector.load %arg1[%c0, %c0_0, %c0_1] : memref<1x4x8xf32, #tpu.memory_space<vmem>>, vector<1x4x8xf32>
    %1 = vector.shape_cast %0 : vector<1x4x8xf32> to vector<4x8xf32>
    %c0_2 = arith.constant 0 : index
    %c0_3 = arith.constant 0 : index
    %2 = vector.load %arg2[%c0_2, %c0_3] : memref<32x4xf32, #tpu.memory_space<vmem>>, vector<32x4xf32>
    %cst = arith.constant dense<0.000000e+00> : vector<32x8xf32>
    %3 = tpu.matmul %2, %1, %cst {dimension_numbers = #tpu.dot_dimension_numbers<[1], [0], [0], [1], [0, 0, 1, 1], [], []>} : vector<32x4xf32>, vector<4x8xf32>, vector<32x8xf32> -> vector<32x8xf32>
    %c0_4 = arith.constant 0 : index
    %c0_5 = arith.constant 0 : index
    %4 = vector.load %arg3[%c0_4, %c0_5] : memref<32x1xf32, #tpu.memory_space<vmem>>, vector<32x1xf32>
    %5 = vector.broadcast %4 : vector<32x1xf32> to vector<32x8xf32>
    %6 = arith.addf %3, %5 : vector<32x8xf32>
    %cst_6 = arith.constant 0.000000e+00 : f32
    %7 = vector.broadcast %cst_6 : f32 to vector<32x8xf32>
    %8 = arith.maximumf %6, %7 : vector<32x8xf32>
    %c0_7 = arith.constant 0 : index
    %c0_8 = arith.constant 0 : index
    %9 = vector.load %arg4[%c0_7, %c0_8] : memref<32x32xf32, #tpu.memory_space<vmem>>, vector<32x32xf32>
    %cst_9 = arith.constant dense<0.000000e+00> : vector<32x8xf32>
    %10 = tpu.matmul %9, %8, %cst_9 {dimension_numbers = #tpu.dot_dimension_numbers<[1], [0], [0], [1], [0, 0, 1, 1], [], []>} : vector<32x32xf32>, vector<32x8xf32>, vector<32x8xf32> -> vector<32x8xf32>
    %c0_10 = arith.constant 0 : index
    %c0_11 = arith.constant 0 : index
    %11 = vector.load %arg5[%c0_10, %c0_11] : memref<32x1xf32, #tpu.memory_space<vmem>>, vector<32x1xf32>
    %12 = vector.broadcast %11 : vector<32x1xf32> to vector<32x8xf32>
    %13 = arith.addf %10, %12 : vector<32x8xf32>
    %cst_12 = arith.constant 0.000000e+00 : f32
    %14 = vector.broadcast %cst_12 : f32 to vector<32x8xf32>
    %15 = arith.maximumf %13, %14 : vector<32x8xf32>
    %c0_13 = arith.constant 0 : index
    %c0_14 = arith.constant 0 : index
    %16 = vector.load %arg6[%c0_13, %c0_14] : memref<16x32xf32, #tpu.memory_space<vmem>>, vector<16x32xf32>
    %cst_15 = arith.constant dense<0.000000e+00> : vector<16x8xf32>
    %17 = tpu.matmul %16, %15, %cst_15 {dimension_numbers = #tpu.dot_dimension_numbers<[1], [0], [0], [1], [0, 0, 1, 1], [], []>} : vector<16x32xf32>, vector<32x8xf32>, vector<16x8xf32> -> vector<16x8xf32>
    %18 = vector.extract_strided_slice %17 {offsets = [0, 0], sizes = [1, 8], strides = [1, 1]} : vector<16x8xf32> to vector<1x8xf32>
    %19 = vector.extract_strided_slice %17 {offsets = [1, 0], sizes = [15, 8], strides = [1, 1]} : vector<16x8xf32> to vector<15x8xf32>
    %20 = vector.shape_cast %19 : vector<15x8xf32> to vector<15x8x1xf32>
    %21 = vector.shape_cast %19 : vector<15x8xf32> to vector<15x1x8xf32>
    %22 = vector.broadcast %20 : vector<15x8x1xf32> to vector<15x8x8xf32>
    %23 = vector.broadcast %21 : vector<15x1x8xf32> to vector<15x8x8xf32>
    %24 = arith.subf %22, %23 : vector<15x8x8xf32>
    %25 = math.absf %24 : vector<15x8x8xf32>
    %26 = vector.shape_cast %25 : vector<15x8x8xf32> to vector<5x3x8x8xf32>
    %cst_16 = arith.constant dense<0.000000e+00> : vector<5x8x8xf32>
    %27 = vector.multi_reduction <add>, %26, %cst_16 [1] : vector<5x3x8x8xf32> to vector<5x8x8xf32>
    %cst_17 = arith.constant 0.000000e+00 : f32
    %28 = vector.broadcast %cst_17 : f32 to vector<5x8x8xf32>
    %29 = arith.subf %28, %27 : vector<5x8x8xf32>
    %30 = math.exp %29 : vector<5x8x8xf32>
    %cst_18 = arith.constant dense<0.000000e+00> : vector<5x8xf32>
    %31 = vector.multi_reduction <add>, %30, %cst_18 [2] : vector<5x8x8xf32> to vector<5x8xf32>
    %c0_19 = arith.constant 0 : index
    %c0_20 = arith.constant 0 : index
    %32 = vector.load %arg7[%c0_19, %c0_20] : memref<5x1xf32, #tpu.memory_space<vmem>>, vector<5x1xf32>
    %33 = vector.broadcast %32 : vector<5x1xf32> to vector<5x8xf32>
    %34 = arith.mulf %33, %31 : vector<5x8xf32>
    %cst_21 = arith.constant dense<0.000000e+00> : vector<8xf32>
    %35 = vector.multi_reduction <add>, %34, %cst_21 [0] : vector<5x8xf32> to vector<8xf32>
    %36 = vector.shape_cast %35 : vector<8xf32> to vector<1x8xf32>
    %37 = arith.addf %18, %36 : vector<1x8xf32>
    %c0_22 = arith.constant 0 : index
    %c0_23 = arith.constant 0 : index
    %38 = memref.load %arg8[%c0_22, %c0_23] : memref<1x1xf32, #tpu.memory_space<smem>>
    %39 = vector.broadcast %38 : f32 to vector<1x8xf32>
    %40 = arith.addf %37, %39 : vector<1x8xf32>
    %41 = arith.negf %40 : vector<1x8xf32>
    %42 = math.exp %41 : vector<1x8xf32>
    %cst_24 = arith.constant 1.000000e+00 : f32
    %43 = vector.broadcast %cst_24 : f32 to vector<1x8xf32>
    %44 = arith.addf %43, %42 : vector<1x8xf32>
    %45 = arith.divf %43, %44 : vector<1x8xf32>
    %c0_25 = arith.constant 0 : index
    %c0_26 = arith.constant 0 : index
    %c0_27 = arith.constant 0 : index
    %46 = vector.load %arg9[%c0_25, %c0_26, %c0_27] : memref<1x1x8xf32, #tpu.memory_space<vmem>>, vector<1x1x8xf32>
    %47 = vector.shape_cast %46 : vector<1x1x8xf32> to vector<1x8xf32>
    %48 = vector.shape_cast %45 : vector<1x8xf32> to vector<1x1x8xf32>
    tpu.vector_store %arg9[%c0_25, %c0_26, %c0_27], %48 {strides = array<i32>} : memref<1x1x8xf32, #tpu.memory_space<vmem>>, vector<1x1x8xf32>,
    return
  }
  func.func @transform_0(%arg0: i32) -> (i32, i32, i32) {
    %c0_i32 = arith.constant 0 : i32
    %c0_i32_0 = arith.constant 0 : i32
    %c0_i32_1 = arith.constant 0 : i32
    return %arg0, %c0_i32, %c0_i32_0 : i32, i32, i32
  }
  func.func @transform_1(%arg0: i32) -> (i32, i32) {
    %c0_i32 = arith.constant 0 : i32
    %c0_i32_0 = arith.constant 0 : i32
    %c0_i32_1 = arith.constant 0 : i32
    return %c0_i32, %c0_i32_0 : i32, i32
  }
  func.func @transform_2(%arg0: i32) -> (i32, i32) {
    %c0_i32 = arith.constant 0 : i32
    %c0_i32_0 = arith.constant 0 : i32
    %c0_i32_1 = arith.constant 0 : i32
    return %c0_i32, %c0_i32_0 : i32, i32
  }
  func.func @transform_3(%arg0: i32) -> (i32, i32) {
    %c0_i32 = arith.constant 0 : i32
    %c0_i32_0 = arith.constant 0 : i32
    %c0_i32_1 = arith.constant 0 : i32
    return %c0_i32, %c0_i32_0 : i32, i32
  }
  func.func @transform_4(%arg0: i32) -> (i32, i32) {
    %c0_i32 = arith.constant 0 : i32
    %c0_i32_0 = arith.constant 0 : i32
    %c0_i32_1 = arith.constant 0 : i32
    return %c0_i32, %c0_i32_0 : i32, i32
  }
  func.func @transform_5(%arg0: i32) -> (i32, i32) {
    %c0_i32 = arith.constant 0 : i32
    %c0_i32_0 = arith.constant 0 : i32
    %c0_i32_1 = arith.constant 0 : i32
    return %c0_i32, %c0_i32_0 : i32, i32
  }
  func.func @transform_6(%arg0: i32) -> (i32, i32) {
    %c0_i32 = arith.constant 0 : i32
    %c0_i32_0 = arith.constant 0 : i32
    %c0_i32_1 = arith.constant 0 : i32
    return %c0_i32, %c0_i32_0 : i32, i32
  }
  func.func @transform_7(%arg0: i32) -> (i32, i32) {
    %c0_i32 = arith.constant 0 : i32
    %c0_i32_0 = arith.constant 0 : i32
    %c0_i32_1 = arith.constant 0 : i32
    return %c0_i32, %c0_i32_0 : i32, i32
  }
  func.func @transform_8(%arg0: i32) -> (i32, i32, i32) {
    %c0_i32 = arith.constant 0 : i32
    %c0_i32_0 = arith.constant 0 : i32
    %c0_i32_1 = arith.constant 0 : i32
    return %arg0, %c0_i32, %c0_i32_0 : i32, i32, i32
  }
}

</mosaic_0001>

<bundles_post_ra>
// kernel: tpu_custom_call.1
= control target key start
LH: loop header
LB: loop body
LE: loop exit
PB: predicated region body
PF: predicated region fallthrough
CT: control target
= control target key end

     0   :  { %vm73_vm0 = vcmask 1043456   ;;  %vm60_vm1 = vcmask 31744   ;;  %v945_v5 = vmov 0   ;;  %s1209_s0 = inlined_call_operand.vmem [shape: f32[1,4,8], index: 0, kind: input, shape index: {}]   ;;  %s1210_s1 = inlined_call_operand.vmem [shape: f32[32,4], index: 1, kind: input, shape index: {}]   ;;  %s1211_s2 = inlined_call_operand.vmem [shape: f32[32,1], index: 2, kind: input, shape index: {}]   ;;  %s1212_s3 = inlined_call_operand.vmem [shape: f32[32,32], index: 3, kind: input, shape index: {}]   ;;  %s1213_s4 = inlined_call_operand.vmem [shape: f32[32,1], index: 4, kind: input, shape index: {}]   ;;  %s1214_s5 = inlined_call_operand.vmem [shape: f32[16,32], index: 5, kind: input, shape index: {}]   ;;  %s1215_s6 = inlined_call_operand.vmem [shape: f32[5,1], index: 6, kind: input, shape index: {}]   ;;  %s1216_s7 = inlined_call_operand.<no memory space> [shape: f32[1,1], index: 7, kind: input, shape index: {}]   ;;  %s1217_s8 = inlined_call_operand.hbm [shape: f32[1,1,8], index: 8, kind: output, shape index: {}]  }
   0x1   :  { %v31_v0 = vld [vmem:[%s1209_s0] sm:$0xf]  ;;  %v33_v2 = vld [vmem:[%s1210_s1 + $0x8] sm:$0xff]  ;;  %v34_v3 = vld [vmem:[%s1210_s1 + $0x10] sm:$0xff]  ;;  %905 = vset.pattern.permute.xlu0 %v945_v5  ;;  %906 = vset.pattern.permute.xlu1 %v945_v5 }
   0x2   :  { %v32_v1 = vld [vmem:[%s1210_s1] sm:$0xff]  ;;  %853 = vmatprep.subr.msk.mxu0 %vm73_vm0, %v31_v0  ;;  %v38_v6 = vld [vmem:[%s1211_s2 + $0x10] sm:$0xff]  ;;  %v35_v7 = vld [vmem:[%s1210_s1 + $0x18] sm:$0xff] }
   0x3   :  { %855 = vmatprep.mubr.msk.f32.mxu0 %vm60_vm1, %v32_v1  ;;  %v36_v4 = vld [vmem:[%s1211_s2] sm:$0xff]  ;;  %854 = vmatpush3.msk.msra.mxu0 %vm73_vm0, %v31_v0  ;;  %v37_v8 = vld [vmem:[%s1211_s2 + $0x8] sm:$0xff] }
   0x4   :  { %856 = vmatmul.mubr.msk.f32.vlgmr.msra.gmra.mrb[0].mxu0 %vm60_vm1, %v33_v2  ;;  %42 = vperm.xlu0 %905, %v36_v4  }
   0x5   :  { %858 = vmatprep.mubr.msk.f32.mxu0 %vm60_vm1, %v34_v3 }
   0x6   :  { %14 = vsyncpa [#allocation4], 0  ;;  %52 = vperm.xlu1 %906, %v38_v6   ;;  %v39_v9 = vld [vmem:[%s1211_s2 + $0x18] sm:$0xff]  ;;  %v170_v10 = vld [vmem:[%s1213_s4] sm:$0xff]  ;;  %vm194_vm2 = vcmask 261120   ;;  %v379_v56 = vlaneseq  ;;  %vm689_vm3 = vcmask 64512  }
   0x7   :  { %v171_v11 = vld [vmem:[%s1213_s4 + $0x8] sm:$0xff]  ;;  %v172_v12 = vld [vmem:[%s1213_s4 + $0x10] sm:$0xff]  ;;  %v173_v13 = vld [vmem:[%s1213_s4 + $0x18] sm:$0xff]  ;;  %v946_v58 = vmov 1966171168   ;;  %vm778_vm4 = vcmask 1041409  }
   0x8   :  { %859 = vmatmul.mubr.msk.f32.gmra.mrb[2].mxu0 %vm60_vm1, %v35_v7  ;;  %47 = vperm.xlu0 %905, %v37_v8   ;;  %v166_v14 = vld [vmem:[%s1212_s3] sm:$0xff]  ;;  %v167_v33 = vld [vmem:[%s1212_s3 + $0x8] sm:$0xff]  ;;  %v168_v34 = vld [vmem:[%s1212_s3 + $0x10] sm:$0xff]  ;;  %v1061_v57 = vshrl.u32 %v379_v56, 7  ;;  %v488_v59 = vunpack.c.l.s4 %v946_v58  ;;  %vm780_vm5 = vcmask 1042434   ;;  %vm782_vm6 = vcmask 1043459  }
   0x9   :  { %869 = vmatprep.mubr.msk.f32.mxu1 %vm194_vm2, %v166_v14  ;;  %v169_v35 = vld [vmem:[%s1212_s3 + $0x18] sm:$0xff]  ;;  %v296_v36 = vld [vmem:[%s1214_s5] sm:$0xff]  ;;  %v297_v55 = vld [vmem:[%s1214_s5 + $0x8] sm:$0xff]  ;;  %vm784_vm7 = vcmask 1044484   ;;  %vm788_vm8 = vcmask 61440   ;;  %s947_s17 = smov [#allocation3]  }
   0xa   :  { %57 = vperm.xlu1 %906, %v39_v9   ;;  %883 = vmatprep.mubr.msk.f32.mxu0 %vm194_vm2, %v296_v36  ;;  %v388_v60 = vsub.s32 2, %v1061_v57  ;;  %v1065_v61 = vsub.s32 0, %v1061_v57  ;;  %v489_v62 = vunpack.c.0.s8 %v488_v59  ;;  %v381_v0 = vsub.s32 1, %v1061_v57  ;;  %s814_s18 = sshll.u32 %s947_s17, 4  ;;  %s815_s18 = int_to_ptr.vmem [resolvable:$true] %s814_s18 }
   0xb   :  { %v395_v1 = vsub.s32 3, %v1061_v57  ;;  %v416_v6 = vsub.s32 6, %v1061_v57  ;;  %v409_v7 = vsub.s32 5, %v1061_v57  ;;  %v423_v58 = vsub.s32 7, %v1061_v57  ;;  %s921_s19 = scalar_lea.vmem %s815_s18, 16  ;;  %s925_s20 = scalar_lea.vmem %s815_s18, 32 }
   0xc   :  { %176 = vperm.xlu0 %905, %v170_v10   ;;  %v492_v5 = vsub.s32 %v489_v62, %v1061_v57  ;;  %vm806_vm9 = vcmask 57344   ;;  %p922_p0 = scmp.ne.s32.totalorder %s815_s18, %s921_s19  ;;  %p926_p1 = scmp.lt.s32.totalorder %s815_s18, %s815_s18 }
   0xd   :  { %p927_p2 = scmp.lt.s32.totalorder %s925_s20, %s921_s19 }
   0xe   :  { %181 = vperm.xlu1 %906, %v171_v11  }
   0xf   :  { %p928_p3 = por %p927_p2, %p926_p1 }
  0x10   :  { %186 = vperm.xlu0 %905, %v172_v12  }
  0x11   :  { %p929_p4 = pnand %p928_p3, %p922_p0 }
  0x12   :  { %191 = vperm.xlu1 %906, %v173_v13  }
  0x83   :  { %v43_v15 = vpop.permute.xlu0 %42 }
  0x85   :  { %v53_v16 = vpop.permute.xlu1 %52 }
  0x87   :  { %v48_v17 = vpop.permute.xlu0 %47 }
  0x89   :  { %v58_v23 = vpop.permute.xlu1 %57 }
  0x8b   :  { %v177_v38 = vpop.permute.xlu0 %176 }
  0x8d   :  { %v182_v37 = vpop.permute.xlu1 %181 }
  0x8f   :  { %v187_v47 = vpop.permute.xlu0 %186 }
  0x91   :  { %v192_v44 = vpop.permute.xlu1 %191 }
  0xd7   :  { %v857_v18 = vpop.f32.mrb[0].mxu0 }
  0xd8   :  { %v149_v19 = vadd.f32 %v857_v18, %v48_v17  ;;  %v143_v20 = vpop.f32.mrb[1].mxu0 }
  0xd9   :  { %v144_v21 = vadd.f32 %v143_v20, %v43_v15 }
  0xda   :  { %v163_v22 = vmax.f32 %v149_v19, 0.0 }
  0xdb   :  { %v162_v24 = vmax.f32 %v144_v21, 0.0  ;;  %v860_v25 = vpop.f32.mrb[2].mxu0 }
  0xdc   :  { %v159_v26 = vadd.f32 %v860_v25, %v58_v23  ;;  %v153_v27 = vpop.f32.mrb[3].mxu0 }
  0xdd   :  { %v154_v28 = vadd.f32 %v153_v27, %v53_v16  ;;  %v886_v29 = vpack.c.bf16 %v163_v22, %v162_v24 }
  0xde   :  { %v165_v30 = vmax.f32 %v159_v26, 0.0 }
  0xdf   :  { %v164_v31 = vmax.f32 %v154_v28, 0.0  ;;  %887 = vmatprep.subr.bf16.mxu1 %v886_v29 }
  0xe0   :  { %889 = vmatpush3.bf16.msra.mxu1 %v886_v29 }
  0xe1   :  { %v890_v32 = vpack.c.bf16 %v165_v30, %v164_v31 }
  0xe3   :  { %891 = vmatprep.subr.bf16.mxu1 %v890_v32 }
  0xe4   :  { %893 = vmatpush3.bf16.msra.mxu1 %v890_v32  ;;  %v402_v32 = vsub.s32 4, %v1061_v57 }
  0xe7   :  { %870 = vmatmul.mubr.msk.f32.vlgmr.msra.gmra.mrb[0].mxu1 %vm194_vm2, %v167_v33 }
  0xe8   :  { %872 = vmatprep.mubr.msk.f32.mxu1 %vm194_vm2, %v168_v34 }
  0xeb   :  { %873 = vmatmul.mubr.msk.f32.gmra.mrb[2].mxu1 %vm194_vm2, %v169_v35 }
 0x1ba   :  { %v871_v39 = vpop.f32.mrb[0].mxu1 }
 0x1bb   :  { %v279_v40 = vadd.f32 %v871_v39, %v182_v37  ;;  %v273_v41 = vpop.f32.mrb[1].mxu1 }
 0x1bc   :  { %v274_v42 = vadd.f32 %v273_v41, %v177_v38 }
 0x1bd   :  { %v293_v43 = vmax.f32 %v279_v40, 0.0 }
 0x1be   :  { %v292_v45 = vmax.f32 %v274_v42, 0.0  ;;  %v874_v46 = vpop.f32.mrb[2].mxu1 }
 0x1bf   :  { %v289_v48 = vadd.f32 %v874_v46, %v192_v44  ;;  %v283_v49 = vpop.f32.mrb[3].mxu1 }
 0x1c0   :  { %v894_v50 = vpack.c.bf16 %v293_v43, %v292_v45  ;;  %v284_v51 = vadd.f32 %v283_v49, %v187_v47 }
 0x1c1   :  { %v295_v52 = vmax.f32 %v289_v48, 0.0 }
 0x1c2   :  { %v294_v53 = vmax.f32 %v284_v51, 0.0  ;;  %895 = vmatprep.subr.bf16.mxu0 %v894_v50 }
 0x1c3   :  { %897 = vmatpush3.bf16.msra.mxu0 %v894_v50 }
 0x1c4   :  { %v898_v54 = vpack.c.bf16 %v295_v52, %v294_v53 }
 0x1c6   :  { %899 = vmatprep.subr.bf16.mxu0 %v898_v54 }
 0x1c7   :  { %901 = vmatpush3.bf16.msra.mxu0 %v898_v54 }
 0x1ca   :  { %884 = vmatmul.mubr.msk.f32.vlgmr.msra.gmra.mrb[4].mxu0 %vm194_vm2, %v297_v55 }
 0x29d   :  { %v1067_v63 = vpop.f32.mrb[4].mxu0 }
 0x29e   :  { %v1071_v2 = vpop.f32.mrb[5].mxu0  ;;  %v445_v3 = vrot.slane %v1067_v63, %v388_v60  ;;  %v431_v4 = vrot.slane %v1067_v63, %v1065_v61  ;;  %v438_v8 = vrot.slane %v1067_v63, %v381_v0  ;;  %v452_v9 = vrot.slane %v1067_v63, %v395_v1 }
 0x29f   :  { %v542_v10 = vrot.slane %v1067_v63, %v492_v5  ;;  %v535_v11 = vcombine.high %v1067_v63, %v1067_v63  ;;  %v493_v12 = vrot.slane %v1071_v2, %v492_v5  ;;  %v486_v13 = vcombine.high %v1071_v2, %v1071_v2 }
 0x2a0   :  { %447 = vbcast.lane.b32.xlu0 %v445_v3, 256  ;;  %433 = vbcast.lane.b32.xlu1 %v431_v4, 256  ;;  %v473_v14 = vrot.slane %v1067_v63, %v416_v6  ;;  %v466_v15 = vrot.slane %v1067_v63, %v409_v7  ;;  %v389_v16 = vrot.slane %v1071_v2, %v388_v60 }
 0x2a1   :  { %v1094_v17 = vrot.slane %v542_v10, %v492_v5  ;;  %v550_v18 = vcombine.high %v542_v10, %v542_v10  ;;  %v549_v19 = vrot.slane %v535_v11, %v492_v5  ;;  %v382_v20 = vrot.slane %v1071_v2, %v381_v0 }
 0x2a2   :  { %v509_v21 = vrot.slane %v493_v12, %v492_v5  ;;  %v501_v22 = vcombine.high %v493_v12, %v493_v12  ;;  %v500_v23 = vrot.slane %v486_v13, %v492_v5  ;;  %v410_v54 = vrot.slane %v1071_v2, %v409_v7 }
 0x2a3   :  { %v580_v24 = vcombine.high %v1094_v17, %v1094_v17  ;;  %v615_v25 = vrot.slane %v1094_v17, %v1065_v61  ;;  %v1101_v26 = vrot.slane %v550_v18, %v492_v5  ;;  %v1103_v27 = vrot.slane %v549_v19, %v492_v5 }
 0x2a4   :  { %440 = vbcast.lane.b32.xlu0 %v438_v8, 256  ;;  %454 = vbcast.lane.b32.xlu1 %v452_v9, 256  ;;  %v551_v28 = vcombine.high %v549_v19, %v549_v19  ;;  %v531_v29 = vcombine.high %v509_v21, %v509_v21  ;;  %v1105_v30 = vrot.slane %v501_v22, %v492_v5 }
 0x2a5   :  { %v502_v31 = vcombine.high %v500_v23, %v500_v23  ;;  %v623_v33 = vrot.slane %v580_v24, %v1065_v61  ;;  %v619_v34 = vrot.slane %v1101_v26, %v1065_v61  ;;  %v582_v35 = vcombine.high %v1101_v26, %v1101_v26 }
 0x2a6   :  { %v581_v36 = vcombine.high %v1103_v27, %v1103_v27  ;;  %v579_v37 = vrot.slane %v551_v28, %v492_v5  ;;  %v591_v38 = vrot.slane %v531_v29, %v1065_v61  ;;  %v587_v39 = vrot.slane %v1105_v30, %v1065_v61 }
 0x2a7   :  { %v627_v40 = vrot.slane %v582_v35, %v1065_v61  ;;  %v1119_v41 = vrot.slane %v502_v31, %v492_v5  ;;  %v1121_v42 = vrot.slane %v500_v23, %v492_v5  ;;  %v631_v43 = vrot.slane %v1103_v27, %v1065_v61 }
 0x2a8   :  { %475 = vbcast.lane.b32.xlu0 %v473_v14, 256  ;;  %468 = vbcast.lane.b32.xlu1 %v466_v15, 256  ;;  %v639_v44 = vrot.slane %v581_v36, %v1065_v61  ;;  %v635_v45 = vrot.slane %v579_v37, %v1065_v61  ;;  %v533_v46 = vcombine.high %v1105_v30, %v1105_v30 }
 0x2a9   :  { %v583_v47 = vcombine.high %v579_v37, %v579_v37  ;;  %v603_v48 = vrot.slane %v1119_v41, %v1065_v61  ;;  %v599_v49 = vrot.slane %v1121_v42, %v1065_v61  ;;  %v532_v50 = vcombine.high %v1121_v42, %v1121_v42 }
 0x2aa   :  { %v534_v51 = vcombine.high %v1119_v41, %v1119_v41  ;;  %v1138_v52 = vrot.slane %v533_v46, %v1065_v61  ;;  %v403_v55 = vrot.slane %v1071_v2, %v402_v32  ;;  %v417_v62 = vrot.slane %v1071_v2, %v416_v6 }
 0x2ab   :  { %v1141_v53 = vrot.slane %v583_v47, %v1065_v61  ;;  %v607_v59 = vrot.slane %v532_v50, %v1065_v61  ;;  %v424_v0 = vrot.slane %v1071_v2, %v423_v58  ;;  %v459_v3 = vrot.slane %v1067_v63, %v402_v32 }
 0x2ac   :  { %391 = vbcast.lane.b32.xlu1 %v389_v16, 256  ;;  %384 = vbcast.lane.b32.xlu0 %v382_v20, 256  ;;  %v611_v60 = vrot.slane %v534_v51, %v1065_v61  ;;  %v396_v4 = vrot.slane %v1071_v2, %v395_v1  ;;  %v480_v5 = vrot.slane %v1067_v63, %v423_v58 }
 0x2b0   :  { %412 = vbcast.lane.b32.xlu1 %v410_v54, 256  ;;  %405 = vbcast.lane.b32.xlu0 %v403_v55, 256 }
 0x2b4   :  { %419 = vbcast.lane.b32.xlu1 %v417_v62, 256  ;;  %426 = vbcast.lane.b32.xlu0 %v424_v0, 256 }
 0x2b8   :  { %461 = vbcast.lane.b32.xlu1 %v459_v3, 256  ;;  %398 = vbcast.lane.b32.xlu0 %v396_v4, 256 }
 0x2bc   :  { %482 = vbcast.lane.b32.xlu0 %v480_v5, 256 }
 0x312   :  { %v448_v7 = vpop.permute.xlu0 %447  ;;  %v434_v8 = vpop.permute.xlu1 %433 }
 0x313   :  { %v668_v9 = vsub.f32 %v448_v7, %v623_v33  ;;  %v666_v35 = vsub.f32 %v434_v8, %v615_v25 }
 0x315   :  { %v683_v11 = vand.u32 2147483647, %v668_v9  ;;  %v681_v47 = vand.u32 2147483647, %v666_v35 }
 0x316   :  { %v441_v10 = vpop.permute.xlu0 %440  ;;  %v455_v6 = vpop.permute.xlu1 %454 }
 0x317   :  { %v669_v12 = vsub.f32 %v455_v6, %v627_v40  ;;  %v705_v16 = vsel %vm689_vm3, %v683_v11, 0.0  ;;  %v701_v0 = vsel %vm689_vm3, %v681_v47, 0.0 }
 0x319   :  { %v684_v13 = vand.u32 2147483647, %v669_v12 }
 0x31a   :  { %v476_v14 = vpop.permute.xlu0 %475  ;;  %v469_v15 = vpop.permute.xlu1 %468 }
 0x31b   :  { %v706_v1 = vsel %vm689_vm3, %v684_v13, 0.0  ;;  %v672_v18 = vsub.f32 %v476_v14, %v639_v44  ;;  %v671_v19 = vsub.f32 %v469_v15, %v635_v45 }
 0x31c   :  { %v707_v20 = vadd.f32 %v706_v1, %v705_v16 }
 0x31d   :  { %v687_v63 = vand.u32 2147483647, %v672_v18  ;;  %v686_v21 = vand.u32 2147483647, %v671_v19 }
 0x31e   :  { %v392_v22 = vpop.permute.xlu1 %391  ;;  %v385_v23 = vpop.permute.xlu0 %384 }
 0x31f   :  { %v711_v24 = vsel %vm689_vm3, %v687_v63, 0.0  ;;  %v710_v28 = vsel %vm689_vm3, %v686_v21, 0.0  ;;  %v660_v29 = vsub.f32 %v392_v22, %v591_v38  ;;  %v659_v30 = vsub.f32 %v385_v23, %v587_v39 }
 0x320   :  { %v712_v31 = vadd.f32 %v711_v24, %v710_v28  ;;  %v667_v38 = vsub.f32 %v441_v10, %v619_v34 }
 0x321   :  { %v675_v32 = vand.u32 2147483647, %v660_v29  ;;  %v674_v33 = vand.u32 2147483647, %v659_v30 }
 0x322   :  { %v413_v36 = vpop.permute.xlu1 %412  ;;  %v406_v37 = vpop.permute.xlu0 %405  ;;  %v682_v62 = vand.u32 2147483647, %v667_v38 }
 0x323   :  { %v691_v40 = vsel %vm689_vm3, %v675_v32, 0.0  ;;  %v690_v41 = vsel %vm689_vm3, %v674_v33, 0.0  ;;  %v663_v42 = vsub.f32 %v413_v36, %v603_v48  ;;  %v662_v44 = vsub.f32 %v406_v37, %v599_v49 }
 0x324   :  { %v692_v45 = vadd.f32 %v691_v40, %v690_v41  ;;  %v703_v8 = vsel %vm689_vm3, %v682_v62, 0.0  ;;  %v745_v40 = vld [vmem:[%s1215_s6] sm:$0x1f] }
 0x325   :  { %v678_v39 = vand.u32 2147483647, %v663_v42  ;;  %v677_v46 = vand.u32 2147483647, %v662_v44  ;;  %v757_v42 = vand.u32 127, %v379_v56 }
 0x326   :  { %v420_v50 = vpop.permute.xlu1 %419  ;;  %v427_v51 = vpop.permute.xlu0 %426 }
 0x327   :  { %v696_v17 = vsel %vm689_vm3, %v678_v39, 0.0  ;;  %v695_v25 = vsel %vm689_vm3, %v677_v46, 0.0  ;;  %v664_v54 = vsub.f32 %v420_v50, %v607_v59  ;;  %v665_v55 = vsub.f32 %v427_v51, %v611_v60 }
 0x328   :  { %v697_v58 = vadd.f32 %v696_v17, %v695_v25  ;;  %v760_v38 = vsub.s32 %v757_v42, %v1061_v57 }
 0x329   :  { %v679_v48 = vand.u32 2147483647, %v664_v54  ;;  %v680_v49 = vand.u32 2147483647, %v665_v55 }
 0x32a   :  { %v462_v3 = vpop.permute.xlu1 %461  ;;  %v399_v26 = vpop.permute.xlu0 %398 }
 0x32b   :  { %v698_v34 = vsel %vm689_vm3, %v679_v48, 0.0  ;;  %v700_v4 = vsel %vm689_vm3, %v680_v49, 0.0  ;;  %v670_v5 = vsub.f32 %v462_v3, %v631_v43  ;;  %v661_v7 = vsub.f32 %v399_v26, %v1138_v52 }
 0x32c   :  { %v699_v59 = vadd.f32 %v698_v34, %v697_v58  ;;  %v702_v60 = vadd.f32 %v701_v0, %v700_v4 }
 0x32d   :  { %v685_v9 = vand.u32 2147483647, %v670_v5  ;;  %v676_v10 = vand.u32 2147483647, %v661_v7  ;;  %v798_v5 = vstv %s1216_s7 }
 0x32e   :  { %v716_v6 = vsub.f32 0.0, %v699_v59  ;;  %v704_v11 = vadd.f32 %v703_v8, %v702_v60  ;;  %v483_v12 = vpop.permute.xlu0 %482 }
 0x32f   :  { %v708_v13 = vsel %vm689_vm3, %v685_v9, 0.0  ;;  %v693_v14 = vsel %vm689_vm3, %v676_v10, 0.0  ;;  %v673_v15 = vsub.f32 %v483_v12, %v1141_v53 }
 0x330   :  { %v722_v16 = vmul.f32 1.442695, %v716_v6  ;;  %v717_v61 = vsub.f32 0.0, %v704_v11  ;;  %v709_v27 = vadd.f32 %v708_v13, %v707_v20  ;;  %v694_v43 = vadd.f32 %v693_v14, %v692_v45 }
 0x331   :  { %v688_v52 = vand.u32 2147483647, %v673_v15 }
 0x332   :  { %907 = vpow2.f32 %v722_v16  ;;  %v724_v1 = vmul.f32 1.442695, %v717_v61  ;;  %v718_v18 = vsub.f32 0.0, %v709_v27  ;;  %v715_v19 = vsub.f32 0.0, %v694_v43 }
 0x333   :  { %v713_v63 = vsel %vm689_vm3, %v688_v52, 0.0 }
 0x334   :  { %909 = vpow2.f32 %v724_v1  ;;  %v726_v21 = vmul.f32 1.442695, %v718_v18  ;;  %v720_v22 = vmul.f32 1.442695, %v715_v19  ;;  %v714_v23 = vadd.f32 %v713_v63, %v712_v31 }
 0x336   :  { %911 = vpow2.f32 %v726_v21  ;;  %v719_v24 = vsub.f32 0.0, %v714_v23 }
 0x337   :  { %913 = vpow2.f32 %v720_v22 }
 0x338   :  { %v728_v28 = vmul.f32 1.442695, %v719_v24 }
 0x33a   :  { %915 = vpow2.f32 %v728_v28 }
 0x33c   :  { %v908_v53 = vpop.eup %907 }
 0x33d   :  { %v733_v20 = vsel %vm689_vm3, %v908_v53, 0.0 }
 0x33e   :  { %v910_v29 = vpop.eup %909  ;;  %734 = vadd.xlane.f32.xlu0 %v733_v20 }
 0x33f   :  { %v736_v33 = vsel %vm689_vm3, %v910_v29, 0.0 }
 0x340   :  { %v912_v30 = vpop.eup %911 }
 0x341   :  { %v739_v32 = vsel %vm689_vm3, %v912_v30, 0.0  ;;  %v914_v35 = vpop.eup %913 }
 0x342   :  { %740 = vadd.xlane.f32.xlu1 %v739_v32  ;;  %737 = vadd.xlane.f32.xlu0 %v736_v33  ;;  %v730_v31 = vsel %vm689_vm3, %v914_v35, 0.0 }
 0x344   :  { %v916_v36 = vpop.eup %915 }
 0x345   :  { %v742_v37 = vsel %vm689_vm3, %v916_v36, 0.0 }
 0x346   :  { %731 = vadd.xlane.f32.xlu1 %v730_v31  ;;  %743 = vadd.xlane.f32.xlu0 %v742_v37 }
 0x357   :  { %748 = vperm.xlu1 %906, %v745_v40  }
 0x3cb   :  { %v735_v41 = vpop.xlane.xlu0 %734 }
 0x3cc   :  { %v765_v46 = vrot.slane %v735_v41, %v760_v38 }
 0x3cf   :  { %v741_v44 = vpop.xlane.xlu1 %740  ;;  %v738_v45 = vpop.xlane.xlu0 %737 }
 0x3d0   :  { %v769_v51 = vrot.slane %v738_v45, %v760_v38  ;;  %v773_v17 = vrot.slane %v741_v44, %v760_v38 }
 0x3d3   :  { %v732_v39 = vpop.xlane.xlu1 %731  ;;  %v744_v50 = vpop.xlane.xlu0 %743 }
 0x3d4   :  { %v761_v47 = vrot.slane %v732_v39, %v760_v38  ;;  %v777_v54 = vrot.slane %v744_v50, %v760_v38 }
 0x3d6   :  { %v779_v25 = vsel %vm778_vm4, %v765_v46, %v761_v47 }
 0x3d7   :  { %v781_v55 = vsel %vm780_vm5, %v769_v51, %v779_v25  ;;  %v749_v56 = vpop.permute.xlu1 %748 }
 0x3d8   :  { %v783_v58 = vsel %vm782_vm6, %v773_v17, %v781_v55 }
 0x3d9   :  { %v785_v62 = vsel %vm784_vm7, %v777_v54, %v783_v58 }
 0x3da   :  { %v787_v48 = vmul.f32 %v785_v62, %v749_v56 }
 0x3dc   :  { %v789_v49 = vsel %vm788_vm8, %v787_v48, 0.0 }
 0x3dd   :  { %v790_v57 = vrot.slane %v789_v49, 4 }
 0x3df   :  { %v791_v0 = vadd.f32 %v790_v57, %v789_v49 }
 0x3e1   :  { %v792_v3 = vrot.slane %v791_v0, 2 }
 0x3e3   :  { %v793_v26 = vadd.f32 %v792_v3, %v791_v0 }
 0x3e5   :  { %v794_v34 = vrot.slane %v793_v26, 1 }
 0x3e7   :  { %v795_v4 = vadd.f32 %v794_v34, %v793_v26 }
 0x3e9   :  { %v796_v7 = vadd.f32 %v795_v4, %v1071_v2 }
 0x3eb   :  { %v799_v59 = vadd.f32 %v798_v5, %v796_v7 }
 0x3ed   :  { %v833_v60 = vmul.f32 -1.442695, %v799_v59 }
 0x3ef   :  { %917 = vpow2.f32 %v833_v60 }
 0x3f9   :  { %v918_v8 = vpop.eup %917 }
 0x3fa   :  { %v803_v9 = vadd.f32 1.0, %v918_v8 }
 0x3fc   :  { %919 = vrcp.f32 %v803_v9 }
 0x406   :  { %v920_v10 = vpop.eup %919 }
 0x407   :  { %807 = vst.msk [vmem:[#allocation3] sm:$0x1] %vm806_vm9, %v920_v10 }
 0x408   :  { %932 = shalt.err (!%p929_p4)
}
 0x409   :  { %s933_s22 = scalar_lea.hbm %s1217_s8, 16 }
 0x40a   :  { %p934_p5 = scmp.ne.s32.totalorder %s1217_s8, %s933_s22  ;;  %p937_p6 = scmp.lt.u32.totalorder %s933_s22, %s1217_s8 }
 0x40c   :  { %p939_p7 = pnand %p937_p6, %p934_p5 }
 0x40e   :  { %942 = shalt.err (!%p939_p7)
}
 0x40f   :  { %817 = dma.vmem_to_hbm [thread:$0]  %s815_s18, 16, %s1217_s8, [#allocation4]  }
 0x410   :  { %943 = dma.done.wait [#allocation4], 16  }
 0x411   :  { %944 = vsyncadd [#allocation4], 4294967280 }
 0x412   :  { %821 = vsyncpa [#allocation4], 1 }

</bundles_post_ra>
